<compile_context>
chip_gen: v5e
topology: v5e:2x2
jax: 0.10.0
libtpu: 0.0.40
codegen_flags: <defaults>
</compile_context>

<pallas_src>
import functools

import jax
import jax.numpy as jnp
from jax.experimental import pallas as pl
from jax.experimental.pallas import tpu as pltpu


# ------------------------------ small helpers ------------------------------

def _ln(x, g, b, eps=1e-5):
    """LayerNorm over the last dim, f32 math."""
    mu = jnp.mean(x, axis=-1, keepdims=True)
    var = jnp.mean(jnp.square(x - mu), axis=-1, keepdims=True)
    return (x - mu) * jax.lax.rsqrt(var + eps) * g + b


def _gelu_new(x):
    """GPT-2 'gelu_new' tanh approximation (matches PyTorch constants)."""
    return 0.5 * x * (1.0 + jnp.tanh(0.7978845608028654 * (x + 0.044715 * x * x * x)))


def _pick_batch_tile(B):
    """Batch elements per grid step.

    Keeps >=2 'parallel' grid steps (one per v7x TensorCore) while growing the
    per-step M = Bt*L matmul rows with batch size to feed the MXU M dimension
    and amortize the ~0.35us per-grid-step overhead."""
    bt = max(1, B // 2)
    while B % bt:
        bt -= 1
    return bt


# ----------------------------- Pallas kernels ------------------------------

def _patch_embed_kernel(x_ref, w_ref, vec_ref, o_ref):
    """Patch conv (as matmul, bf16 operands / f32 accum) + LayerNorm, fused."""
    x = x_ref[...]                                     # (Bt, Lv, K) f32
    Bt, Lv, K = x.shape
    H = w_ref.shape[1]
    vec = vec_ref[...]                                 # (3, H): bias, ln_g, ln_b
    h = jnp.dot(x.reshape(Bt * Lv, K).astype(jnp.bfloat16), w_ref[...],
                preferred_element_type=jnp.float32) + vec[0:1]
    h = _ln(h, vec[1:2], vec[2:3])
    o_ref[...] = h.reshape(Bt, Lv, H)


def patch_embed(patches, swin_p, *, batch_tile=None):
    B, Lv, K = patches.shape
    H = swin_p["patch_w"].shape[1]
    bt = batch_tile or _pick_batch_tile(B)
    return pl.pallas_call(
        _patch_embed_kernel,
        out_shape=jax.ShapeDtypeStruct((B, Lv, H), jnp.float32),
        grid=(B // bt,),
        in_specs=[
            pl.BlockSpec((bt, Lv, K), lambda i: (i, 0, 0)),
            pl.BlockSpec((K, H), lambda i: (0, 0)),
            pl.BlockSpec((3, H), lambda i: (0, 0)),
        ],
        out_specs=pl.BlockSpec((bt, Lv, H), lambda i: (i, 0, 0)),
        compiler_params=pltpu.CompilerParams(dimension_semantics=("parallel",)),
    )(patches, swin_p["patch_w"], swin_p["patch_vec"])


def _block_kernel(*refs, n_head, causal, has_mask, add_pos, epilogue):
    """Fused pre-LN transformer block on a (Bt, L, H) batch tile.

    [wpe add] -> LN1 -> per-head QKV (full K=H dots) -> attention with a single
    fused padding+causal select -> lane-concat heads -> ONE (M,H)@(H,H)
    out-proj -> residual -> LN2 -> GELU MLP -> residual [-> swin final LN
    (+ visual_projection)].  Single HBM read + write of the activation tile.
    """
    it = iter(refs)
    x_ref = next(it)
    mask_ref = next(it) if has_mask else None
    pos_ref = next(it) if add_pos else None
    vec_ref = next(it)
    wq_ref, wk_ref, wv_ref = next(it), next(it), next(it)
    qkvb_ref = next(it)
    projw_ref = next(it)
    fcw_ref, fcb_ref, fc2w_ref = next(it), next(it), next(it)
    epi_ref = next(it) if epilogue is not None else None
    vpw_ref = next(it) if epilogue == "ln_proj" else None
    o_ref = next(it)

    x = x_ref[...]                                     # (Bt, L, H) f32
    Bt, L, H = x.shape
    dh = H // n_head

    if add_pos:
        x = x + pos_ref[...][None, :, :]               # wpe fused into block 0

    vec = vec_ref[...]                                 # (6, H)
    ln1_g, ln1_b = vec[0:1], vec[1:2]
    ln2_g, ln2_b = vec[2:3], vec[3:4]
    proj_b, fc2_b = vec[4:5], vec[5:6]

    xm = x.reshape(Bt * L, H)                          # (M, H) residual stream (f32)

    # ---- LN1 (f32) ----
    h1 = _ln(xm, ln1_g, ln1_b)
    h1b = h1.astype(jnp.bfloat16)

    # ---- fused padding + causal mask (single select); skipped for swin ----
    if has_mask or causal:
        neg = jnp.float32(-1e9)
        allowed = None
        if causal:
            row = jax.lax.broadcasted_iota(jnp.int32, (L, L), 0)
            col = jax.lax.broadcasted_iota(jnp.int32, (L, L), 1)
            allowed = (col <= row)[None, :, :]                      # (1, L, L)
        if has_mask:
            key_ok = (mask_ref[...] > 0.5)[:, None, :]              # (Bt, 1, L)
            allowed = key_ok if allowed is None else jnp.logical_and(allowed, key_ok)

    qkvb = qkvb_ref[...]                               # (3, n_head, 1, dh) f32

    # ---- per-head attention; weights pre-split per head (no lane slicing),
    #      q scale pre-folded into wq / q-bias at init ----
    head_outs = []
    # TODO(synk): at n_head=12 switch to lax.fori_loop(..., unroll=True).
    for hh in range(n_head):
        q = jnp.dot(h1b, wq_ref[hh], preferred_element_type=jnp.float32) + qkvb[0, hh]
        k = jnp.dot(h1b, wk_ref[hh], preferred_element_type=jnp.float32) + qkvb[1, hh]
        v = jnp.dot(h1b, wv_ref[hh], preferred_element_type=jnp.float32) + qkvb[2, hh]
        q = q.reshape(Bt, L, dh).astype(jnp.bfloat16)
        k = k.reshape(Bt, L, dh).astype(jnp.bfloat16)
        v = v.reshape(Bt, L, dh).astype(jnp.bfloat16)
        s = jnp.einsum("bqd,bkd->bqk", q, k, preferred_element_type=jnp.float32)
        if has_mask or causal:
            s = jnp.where(allowed, s, neg)
        s = s - jnp.max(s, axis=-1, keepdims=True)
        p = jnp.exp(s)
        p = p * pl.reciprocal(jnp.sum(p, axis=-1, keepdims=True), approx=True)
        o_h = jnp.einsum("bqk,bkd->bqd", p.astype(jnp.bfloat16), v,
                         preferred_element_type=jnp.float32)
        head_outs.append(o_h.reshape(Bt * L, dh))

    # One full-K out-projection over the lane-concatenated heads.
    attn = jnp.concatenate(head_outs, axis=-1).astype(jnp.bfloat16)   # (M, H)
    xm = xm + jnp.dot(attn, projw_ref[...],
                      preferred_element_type=jnp.float32) + proj_b

    # ---- LN2 + GELU MLP (gelu_new) ----
    h2 = _ln(xm, ln2_g, ln2_b)
    f = jnp.dot(h2.astype(jnp.bfloat16), fcw_ref[...],
                preferred_element_type=jnp.float32) + fcb_ref[...]
    f = _gelu_new(f)
    xm = xm + jnp.dot(f.astype(jnp.bfloat16), fc2w_ref[...],
                      preferred_element_type=jnp.float32) + fc2_b

    # ---- optional fused epilogue: swin final LN (+ visual_projection) ----
    if epilogue is not None:
        evec = epi_ref[...]
        xm = _ln(xm, evec[0:1], evec[1:2])
        if epilogue == "ln_proj":
            xm = jnp.dot(xm.astype(jnp.bfloat16), vpw_ref[...],
                         preferred_element_type=jnp.float32) + evec[2:3]

    o_ref[...] = xm.reshape(Bt, L, H)


def transformer_block(x, p, *, n_head, mask=None, causal=False, pos=None,
                      epilogue=None, epi_vec=None, vp_w=None, batch_tile=None):
    """x: (B, L, H) f32.  mask: optional (B, L) float {0,1} key-padding mask.
    pos: optional (L, H) position embeddings added before the block (fused)."""
    B, L, H = x.shape
    dh = H // n_head
    F_ = p["fc_w"].shape[1]
    bt = batch_tile or _pick_batch_tile(B)
    has_mask = mask is not None
    add_pos = pos is not None

    kernel = functools.partial(_block_kernel, n_head=n_head, causal=causal,
                               has_mask=has_mask, add_pos=add_pos,
                               epilogue=epilogue)

    ops = [x]
    specs = [pl.BlockSpec((bt, L, H), lambda i: (i, 0, 0))]
    if has_mask:
        ops.append(mask)
        specs.append(pl.BlockSpec((bt, L), lambda i: (i, 0)))
    if add_pos:
        ops.append(pos)
        specs.append(pl.BlockSpec((L, H), lambda i: (0, 0)))
    ops += [p["vec"], p["wq"], p["wk"], p["wv"], p["qkv_b"], p["proj_w"],
            p["fc_w"], p["fc_b"], p["fc2_w"]]
    specs += [
        pl.BlockSpec((6, H), lambda i: (0, 0)),
        pl.BlockSpec((n_head, H, dh), lambda i: (0, 0, 0)),
        pl.BlockSpec((n_head, H, dh), lambda i: (0, 0, 0)),
        pl.BlockSpec((n_head, H, dh), lambda i: (0, 0, 0)),
        pl.BlockSpec((3, n_head, 1, dh), lambda i: (0, 0, 0, 0)),
        pl.BlockSpec((H, H), lambda i: (0, 0)),
        pl.BlockSpec((H, F_), lambda i: (0, 0)),
        pl.BlockSpec((1, F_), lambda i: (0, 0)),
        pl.BlockSpec((F_, H), lambda i: (0, 0)),
    ]
    if epilogue is not None:
        ops.append(epi_vec)
        specs.append(pl.BlockSpec((epi_vec.shape[0], H), lambda i: (0, 0)))
        if epilogue == "ln_proj":
            ops.append(vp_w)
            specs.append(pl.BlockSpec((H, H), lambda i: (0, 0)))

    # TODO(synk): at the real 768-dim config set vmem_limit_bytes here and mark
    # the constant-index weight BlockSpecs pipeline_mode=pl.Buffered(1)
    # (column-tile qkv/fc/fc2 on v5e).
    return pl.pallas_call(
        kernel,
        out_shape=jax.ShapeDtypeStruct((B, L, H), jnp.float32),
        grid=(B // bt,),
        in_specs=specs,
        out_specs=pl.BlockSpec((bt, L, H), lambda i: (i, 0, 0)),
        compiler_params=pltpu.CompilerParams(dimension_semantics=("parallel",)),
    )(*ops)


def _head_kernel(x_ref, lnf_ref, w1_ref, hvec_ref, w2_ref, clsb_ref, o_ref):
    """GPT2 final LN + adaptive_avg_pool1d(1) + Linear + BatchNorm1d(eval)
    + Dropout(identity) + classifier, fused.  Output written lane-dense
    (128-wide padded slab), sliced to num_class outside the kernel."""
    x = x_ref[...]                                     # (B, L, H) f32
    lnf = lnf_ref[...]                                 # (2, H)
    h = _ln(x, lnf[0:1], lnf[1:2])
    pooled = jnp.mean(h, axis=1)                       # (B, H)
    hvec = hvec_ref[...]                               # (5, I): b1, bn_g, bn_b, bn_rm, bn_rv
    t = jnp.dot(pooled.astype(jnp.bfloat16), w1_ref[...],
                preferred_element_type=jnp.float32) + hvec[0:1]
    t = (t - hvec[3:4]) * jax.lax.rsqrt(hvec[4:5] + 1e-5) * hvec[1:2] + hvec[2:3]
    o_ref[...] = jnp.dot(t.astype(jnp.bfloat16), w2_ref[...],
                         preferred_element_type=jnp.float32) + clsb_ref[...]


def classification_head(hidden, head_p):
    B, L, H = hidden.shape
    I = head_p["inter_w"].shape[1]
    Cp = head_p["cls_w_pad"].shape[1]
    out = pl.pallas_call(
        _head_kernel,
        out_shape=jax.ShapeDtypeStruct((B, Cp), jnp.float32),
        grid=(1,),
        in_specs=[
            pl.BlockSpec((B, L, H), lambda i: (0, 0, 0)),
            pl.BlockSpec((2, H), lambda i: (0, 0)),
            pl.BlockSpec((H, I), lambda i: (0, 0)),
            pl.BlockSpec((5, I), lambda i: (0, 0)),
            pl.BlockSpec((I, Cp), lambda i: (0, 0)),
            pl.BlockSpec((1, Cp), lambda i: (0, 0)),
        ],
        out_specs=pl.BlockSpec((B, Cp), lambda i: (0, 0)),
        compiler_params=pltpu.CompilerParams(dimension_semantics=("arbitrary",)),
    )(hidden, head_p["lnf_vec"], head_p["inter_w"], head_p["head_vec"],
      head_p["cls_w_pad"], head_p["cls_b_pad"])
    return out[:, :head_p["num_class"]]


# ------------------------------- model glue --------------------------------

def efvlegpt2_swin_classification(params, input_ids, question_attention_mask,
                                  pixel_values, *, n_head=2, sub_ver="v0"):
    swin = params["swin"]
    patch = params["patch"]

    # --- visual branch: im2col (glue) + fused patch-embed, then a ViT-style
    #     pre-LN block with the swin final LN (+ VisualBert visual_projection
    #     for v0) fused into the block epilogue.
    # TODO(synk): the single ViT-style block stands in for the hierarchical
    # swin-tiny backbone (shifted windows, patch merging, pretrained weights).
    B, C, Hi, Wi = pixel_values.shape
    nh, nw = Hi // patch, Wi // patch
    Lv = nh * nw
    patches = pixel_values.reshape(B, C, nh, patch, nw, patch)
    patches = patches.transpose(0, 2, 4, 1, 3, 5).reshape(B, Lv, C * patch * patch)
    x = patch_embed(patches, swin)                                   # (B, Lv, H)
    if sub_ver == "v0":
        visual_embeds = transformer_block(
            x, swin["block"], n_head=n_head, causal=False,
            epilogue="ln_proj", epi_vec=swin["epi_ln_proj"], vp_w=swin["vp_w"])
    else:  # v1: final LN only, no visual projection
        visual_embeds = transformer_block(
            x, swin["block"], n_head=n_head, causal=False,
            epilogue="ln", epi_vec=swin["epi_ln"])
    visual_attention_mask = jnp.ones(visual_embeds.shape[:-1], jnp.float32)

    # --- question branch: GPT2 wte lookup (gather stays as XLA glue) ---
    question_embeds = jnp.take(params["wte"], input_ids, axis=0)     # (B, Lq, H)

    # --- concat and decode (vis_pos_emb=None branch of the PyTorch forward) ---
    inputs_embeds = jnp.concatenate([question_embeds, visual_embeds], axis=1)
    attention_mask = jnp.concatenate(
        [question_attention_mask.astype(jnp.float32), visual_attention_mask], axis=1)

    gpt2 = params["gpt2"]
    L = inputs_embeds.shape[1]
    h = inputs_embeds
    for li, blk in enumerate(gpt2["blocks"]):
        h = transformer_block(h, blk, n_head=n_head, causal=True,
                              mask=attention_mask,
                              pos=gpt2["wpe"][:L] if li == 0 else None)

    # --- fused GPT2 final LN + pool + Linear + BatchNorm(eval) + classifier ---
    return classification_head(h, params["head"])


# --------------------------- parameter creation ----------------------------

def init_params(key, *, hidden=32, n_head=2, vocab=50, max_pos=64,
                n_gpt_layers=2, in_ch=3, patch=4, inter=16, num_class=12,
                cls_pad=128):
    keys = iter(jax.random.split(key, 64))
    H = hidden
    dh = H // n_head

    def w(shape, scale=0.02):
        return jax.random.normal(next(keys), shape, jnp.float32) * scale

    ones_h = jnp.ones((H,), jnp.float32)
    zeros_h = jnp.zeros((H,), jnp.float32)

    def block_params():
        # Per-head (n_head, H, dh) weight stacks (no in-kernel lane slicing);
        # the 1/sqrt(dh) attention scale is folded into wq / q-bias here.
        attn_scale = 1.0 / float(dh) ** 0.5

        def per_head(m):                     # (H, H) -> (n_head, H, dh)
            return m.reshape(H, n_head, dh).transpose(1, 0, 2)

        qb = kb = vb = jnp.zeros((H,), jnp.float32)
        return dict(
            # rows: ln1_g, ln1_b, ln2_g, ln2_b, proj_b, fc2_b
            vec=jnp.stack([ones_h, zeros_h, ones_h, zeros_h, zeros_h, zeros_h]),
            wq=(per_head(w((H, H))) * attn_scale).astype(jnp.bfloat16),
            wk=per_head(w((H, H))).astype(jnp.bfloat16),
            wv=per_head(w((H, H))).astype(jnp.bfloat16),
            qkv_b=jnp.stack([(qb * attn_scale).reshape(n_head, 1, dh),
                             kb.reshape(n_head, 1, dh),
                             vb.reshape(n_head, 1, dh)]),     # (3, n_head, 1, dh)
            proj_w=w((H, H)).astype(jnp.bfloat16),
            fc_w=w((H, 4 * H)).astype(jnp.bfloat16),
            fc_b=jnp.zeros((1, 4 * H), jnp.float32),
            fc2_w=w((4 * H, H)).astype(jnp.bfloat16),
        )

    vp_b = jnp.zeros((H,), jnp.float32)
    swin = dict(
        patch_w=w((in_ch * patch * patch, H)).astype(jnp.bfloat16),
        patch_vec=jnp.stack([zeros_h, ones_h, zeros_h]),   # patch_b, ln_g, ln_b
        block=block_params(),
        epi_ln_proj=jnp.stack([ones_h, zeros_h, vp_b]),    # lnf_g, lnf_b, vp_b
        epi_ln=jnp.stack([ones_h, zeros_h]),               # lnf_g, lnf_b
        vp_w=w((H, H)).astype(jnp.bfloat16),               # VisualBert visual_projection
    )
    gpt2 = dict(
        wpe=w((max_pos, H)),
        blocks=[block_params() for _ in range(n_gpt_layers)],
    )
    cls_w = w((inter, num_class))
    cls_w_pad = jnp.zeros((inter, cls_pad), jnp.float32).at[:, :num_class].set(cls_w)
    head = dict(
        lnf_vec=jnp.stack([ones_h, zeros_h]),              # GPT2 final LN gamma/beta
        inter_w=w((H, inter)).astype(jnp.bfloat16),
        # rows: inter_b, bn_g, bn_b, bn_running_mean, bn_running_var
        head_vec=jnp.stack([jnp.zeros((inter,), jnp.float32),
                            jnp.ones((inter,), jnp.float32),
                            jnp.zeros((inter,), jnp.float32),
                            jnp.zeros((inter,), jnp.float32),
                            jnp.ones((inter,), jnp.float32)]),
        cls_w_pad=cls_w_pad.astype(jnp.bfloat16),           # lane-dense padded classifier
        cls_b_pad=jnp.zeros((1, cls_pad), jnp.float32),
        num_class=num_class,
    )
    return dict(patch=patch, swin=swin, wte=w((vocab, H)), gpt2=gpt2, head=head)


# ---------------------------------- main -----------------------------------

if __name__ == "__main__":
    key = jax.random.PRNGKey(0)
    k_param, k_img, k_ids = jax.random.split(key, 3)

    B, Lq = 2, 8
    params = init_params(k_param)

    # pixel_values in NCHW, like the PyTorch module's img['pixel_values']
    pixel_values = jax.random.normal(k_img, (B, 3, 16, 16), jnp.float32)
    input_ids = jax.random.randint(k_ids, (B, Lq), 0, 50)
    question_attention_mask = jnp.ones((B, Lq), jnp.float32).at[1, 6:].set(0.0)

    logits = efvlegpt2_swin_classification(
        params, input_ids, question_attention_mask, pixel_values,
        n_head=2, sub_ver="v0",
    )
    logits = jax.block_until_ready(logits)
    assert logits.shape == (B, 12) and logits.dtype == jnp.float32
    print("KERNEL_OK")
</pallas_src>

<mosaic_0001>
module attributes {stable_mosaic.version = 11 : i64} {
  func.func @_patch_embed_kernel(%arg0: i32, %arg1: memref<1x16x48xf32, #tpu.memory_space<vmem>>, %arg2: memref<48x32xbf16, #tpu.memory_space<vmem>>, %arg3: memref<3x32xf32, #tpu.memory_space<vmem>>, %arg4: memref<1x16x32xf32, #tpu.memory_space<vmem>>) attributes {dimension_semantics = [#tpu.dimension_semantics<parallel>], iteration_bounds = array<i64: 2>, scalar_prefetch = 0 : i64, scratch_operands = 0 : i64, tpu.core_type = #tpu.core_type<tc>, window_params = [{transform_indices = @transform_0, window_bounds = array<i64: 1, 16, 48>}, {pipeline_mode = #tpu.pipeline_mode<synchronous>, transform_indices = @transform_1, window_bounds = array<i64: 48, 32>}, {pipeline_mode = #tpu.pipeline_mode<synchronous>, transform_indices = @transform_2, window_bounds = array<i64: 3, 32>}, {transform_indices = @transform_3, window_bounds = array<i64: 1, 16, 32>}]} {
    %c0 = arith.constant 0 : index
    %c0_0 = arith.constant 0 : index
    %c0_1 = arith.constant 0 : index
    %0 = vector.load %arg1[%c0, %c0_0, %c0_1] : memref<1x16x48xf32, #tpu.memory_space<vmem>>, vector<1x16x48xf32>
    %c0_2 = arith.constant 0 : index
    %c0_3 = arith.constant 0 : index
    %1 = vector.load %arg3[%c0_2, %c0_3] : memref<3x32xf32, #tpu.memory_space<vmem>>, vector<3x32xf32>
    %2 = vector.shape_cast %0 : vector<1x16x48xf32> to vector<16x48xf32>
    %3 = arith.truncf %2 : vector<16x48xf32> to vector<16x48xbf16>
    %c0_4 = arith.constant 0 : index
    %c0_5 = arith.constant 0 : index
    %4 = vector.load %arg2[%c0_4, %c0_5] : memref<48x32xbf16, #tpu.memory_space<vmem>>, vector<48x32xbf16>
    %cst = arith.constant dense<0.000000e+00> : vector<16x32xf32>
    %5 = tpu.matmul %3, %4, %cst {dimension_numbers = #tpu.dot_dimension_numbers<[1], [0], [0], [1], [0, 0, 1, 1], [], []>} : vector<16x48xbf16>, vector<48x32xbf16>, vector<16x32xf32> -> vector<16x32xf32>
    %6 = vector.extract_strided_slice %1 {offsets = [0, 0], sizes = [1, 32], strides = [1, 1]} : vector<3x32xf32> to vector<1x32xf32>
    %7 = vector.broadcast %6 : vector<1x32xf32> to vector<16x32xf32>
    %8 = arith.addf %5, %7 : vector<16x32xf32>
    %9 = vector.extract_strided_slice %1 {offsets = [1, 0], sizes = [1, 32], strides = [1, 1]} : vector<3x32xf32> to vector<1x32xf32>
    %10 = vector.extract_strided_slice %1 {offsets = [2, 0], sizes = [1, 32], strides = [1, 1]} : vector<3x32xf32> to vector<1x32xf32>
    %cst_6 = arith.constant dense<0.000000e+00> : vector<16xf32>
    %11 = vector.multi_reduction <add>, %8, %cst_6 [1] : vector<16x32xf32> to vector<16xf32>
    %12 = vector.shape_cast %11 : vector<16xf32> to vector<16x1xf32>
    %cst_7 = arith.constant 3.200000e+01 : f32
    %13 = vector.broadcast %cst_7 : f32 to vector<16x1xf32>
    %14 = arith.divf %12, %13 : vector<16x1xf32>
    %15 = vector.broadcast %14 : vector<16x1xf32> to vector<16x32xf32>
    %16 = arith.subf %8, %15 : vector<16x32xf32>
    %17 = arith.mulf %16, %16 : vector<16x32xf32>
    %cst_8 = arith.constant dense<0.000000e+00> : vector<16xf32>
    %18 = vector.multi_reduction <add>, %17, %cst_8 [1] : vector<16x32xf32> to vector<16xf32>
    %19 = vector.shape_cast %18 : vector<16xf32> to vector<16x1xf32>
    %cst_9 = arith.constant 3.200000e+01 : f32
    %20 = vector.broadcast %cst_9 : f32 to vector<16x1xf32>
    %21 = arith.divf %19, %20 : vector<16x1xf32>
    %22 = vector.broadcast %14 : vector<16x1xf32> to vector<16x32xf32>
    %23 = arith.subf %8, %22 : vector<16x32xf32>
    %cst_10 = arith.constant 9.99999974E-6 : f32
    %24 = vector.broadcast %cst_10 : f32 to vector<16x1xf32>
    %25 = arith.addf %21, %24 : vector<16x1xf32>
    %26 = math.rsqrt %25 : vector<16x1xf32>
    %27 = vector.broadcast %26 : vector<16x1xf32> to vector<16x32xf32>
    %28 = arith.mulf %23, %27 : vector<16x32xf32>
    %29 = vector.broadcast %9 : vector<1x32xf32> to vector<16x32xf32>
    %30 = arith.mulf %28, %29 : vector<16x32xf32>
    %31 = vector.broadcast %10 : vector<1x32xf32> to vector<16x32xf32>
    %32 = arith.addf %30, %31 : vector<16x32xf32>
    %33 = vector.shape_cast %32 : vector<16x32xf32> to vector<1x16x32xf32>
    %c0_11 = arith.constant 0 : index
    %c0_12 = arith.constant 0 : index
    %c0_13 = arith.constant 0 : index
    %34 = vector.load %arg4[%c0_11, %c0_12, %c0_13] : memref<1x16x32xf32, #tpu.memory_space<vmem>>, vector<1x16x32xf32>
    tpu.vector_store %arg4[%c0_11, %c0_12, %c0_13], %33 {strides = array<i32>} : memref<1x16x32xf32, #tpu.memory_space<vmem>>, vector<1x16x32xf32>,
    return
  }
  func.func @transform_0(%arg0: i32) -> (i32, i32, i32) {
    %c0_i32 = arith.constant 0 : i32
    %c0_i32_0 = arith.constant 0 : i32
    %c0_i32_1 = arith.constant 0 : i32
    return %arg0, %c0_i32, %c0_i32_0 : i32, i32, i32
  }
  func.func @transform_1(%arg0: i32) -> (i32, i32) {
    %c0_i32 = arith.constant 0 : i32
    %c0_i32_0 = arith.constant 0 : i32
    %c0_i32_1 = arith.constant 0 : i32
    return %c0_i32, %c0_i32_0 : i32, i32
  }
  func.func @transform_2(%arg0: i32) -> (i32, i32) {
    %c0_i32 = arith.constant 0 : i32
    %c0_i32_0 = arith.constant 0 : i32
    %c0_i32_1 = arith.constant 0 : i32
    return %c0_i32, %c0_i32_0 : i32, i32
  }
  func.func @transform_3(%arg0: i32) -> (i32, i32, i32) {
    %c0_i32 = arith.constant 0 : i32
    %c0_i32_0 = arith.constant 0 : i32
    %c0_i32_1 = arith.constant 0 : i32
    return %arg0, %c0_i32, %c0_i32_0 : i32, i32, i32
  }
}

</mosaic_0001>

<bundles_post_ra>
// kernel: tpu_custom_call.1
= control target key start
LH: loop header
LB: loop body
LE: loop exit
PB: predicated region body
PF: predicated region fallthrough
CT: control target
= control target key end

     0   :  { %8 = vsyncpa [#allocation3], 0  ;;  %s628_s0 = inlined_call_operand.vmem [shape: f32[2,16,48], index: 0, kind: input, shape index: {}]   ;;  %s629_s1 = inlined_call_operand.vmem [shape: bf16[48,32], index: 1, kind: input, shape index: {}]   ;;  %s630_s2 = inlined_call_operand.vmem [shape: f32[3,32], index: 2, kind: input, shape index: {}]   ;;  %s631_s3 = inlined_call_operand.hbm [shape: f32[2,16,32], index: 3, kind: output, shape index: {}]  }
   0x1   :  { %10 = vsyncpa [#allocation3 + $0x1], 0  ;;  %s520_s12 = smov 0   ;;  %s522_s13 = smov 0  }
   0x2   :  { %s524_s14 = smov 0   ;;  %s526_s15 = smov 0  }
   0x3 LB: > { %s541_s16 = sadd.s32 4294967295, %s495_s15   ;;  %s355_s17 = sadd.s32 4294967294, %s495_s15   ;;  %s495_s15 = sphi %s526_s15, %s637_s15   ;;  %s491_s14 = sphi %s524_s14, %s636_s14   ;;  %s487_s13 = sphi %s522_s13, %s635_s13   ;;  %s483_s12 = sphi %s520_s12, %s634_s12  }
   0x4   : > { %s545_s18 = sadd.s32 1, %s495_s15   ;;  %s91_s19 = sadd.s32 1, %s491_s14 }
   0x5   : > { %s88_s20 = ssub.s32 %s495_s15, %s545_s18  ;;  %p101_p0 = scmp.ne.s32.totalorder %s491_s14, %s487_s13 }
   0x6   : > { %p89_p1 = scmp.eq.s32.totalorder %s88_s20, 0  ;;  %p102_p2 = scmp.eq.s32.totalorder %s541_s16, 1 }
   0x7   : > { %p107_p3 = scmp.ne.s32.totalorder %s487_s13, %s483_s12  ;;  %p108_p4 = scmp.eq.s32.totalorder %s355_s17, 1 }
   0x8   : > { %s556_s21 = scalar_select %p89_p1, %s491_s14, %s91_s19  }
   0x9   : > { %p558_p5 = por %p102_p2, %p101_p0  ;;  %p562_p6 = por %p108_p4, %p107_p3 }
   0xa   : > { %p358_p7 = scmp.ge.s32.totalorder %s495_s15, 1  ;;  %p140_p8 = scmp.lt.s32.totalorder %s495_s15, 3 }
   0xc   : > { %p141_p9 = pnand %p358_p7, %p140_p8 }
   0xd   : > { %p164_p10 = scmp.lt.s32.totalorder (!%p141_p9), %s541_s16, 1  ;;  %s161_s10 = sand.u32 (!%p141_p9), 1, %s487_s13  }
   0xe   : > { %144 = sbr.rel (%p141_p9) target bundleno = 439 (0x1b7), region = 32  ;;  %s359_s11 = sshll.u32 (!%p141_p9), %s161_s10, 4 }
   0xf   : > { %s384_s17 = sshll.u32 (!%p141_p9), %s541_s16, 4  ;;  %s163_s25 = scalar_lea.vmem (!%p141_p9), [#allocation2], %s359_s11 }
  0x10   : > { %s289_s24 = scalar_lea.hbm (!%p141_p9), %s631_s3, %s384_s17  ;;  %s290_s26 = sshll.u32 (!%p141_p9), %s163_s25, 4  ;;  %s291_s26 = int_to_ptr.vmem [resolvable:$true] %s290_s26 }
  0x11   : > { %s292_s27 = sshll.u32 (!%p141_p9), %s289_s24, 4  ;;  %s293_s27 = int_to_ptr.hbm [resolvable:$true] %s292_s27 }
  0x13   : > { %v383_v0 = vld [vmem:[%s629_s1 + $0x10] sm:$0xff]  ;;  %v382_v1 = vld [vmem:[%s629_s1 + $0x8] sm:$0xff]  ;;  %s165_s28 = scalar_select %p164_p10, %s541_s16, 1  ;;  %v381_v2 = vld [vmem:[%s629_s1] sm:$0xff]  ;;  %vm199_vm0 = vcmask 392192   ;;  %vm217_vm1 = vcmask 261120  }
  0x14   : > { %208 = vmatpush.bf16.msra.mxu0 %v383_v0  ;;  %v585_v6 = vld [vmem:[%s630_s2] sm:$0x7]  ;;  %v497_v14 = vmov 32.0   ;;  %s278_s16 = scalar_lea.sflag [#allocation3], %s161_s10 }
  0x15   : > { %s380_s29 = sshll.u32 %s165_s28, 4  ;;  %v180_v7 = vperm.slane %v585_v6, 0  ;;  %427 = vrcp.f32 %v497_v14  ;;  %v269_v45 = vperm.slane %v585_v6, 1  ;;  %v272_v48 = vperm.slane %v585_v6, 2  ;;  %s447_s28 = sshra.s32 %s293_s27, 4  ;;  %s448_s28 = int_to_ptr.hbm [resolvable:$true] %s447_s28 }
  0x16   : > { %s168_s5 = scalar_lea.vmem %s628_s0, %s380_s29  ;;  %s449_s29 = scalar_lea.hbm %s448_s28, 16 }
  0x17   : > { %v170_v3 = vld [vmem:[%s168_s5] sm:$0xff]  ;;  %v171_v4 = vld [vmem:[%s168_s5 + $0x8] sm:$0xff]  ;;  %p450_p11 = scmp.ne.s32.totalorder %s448_s28, %s449_s29  ;;  %s453_s5 = scalar_lea.hbm %s631_s3, 32 }
  0x18   : > { %209 = vmatpush.bf16.msra.mxu0 %v382_v1  ;;  %v173_v5 = vpack.c.bf16 %v171_v4, %v170_v3  ;;  %p454_p0 = scmp.lt.s32.totalorder %s448_s28, %s631_s3  ;;  %p455_p1 = scmp.lt.s32.totalorder %s453_s5, %s449_s29 }
  0x19   : > { %p451_p12 = pnand %p450_p11, %p558_p5 }
  0x1a   : > { %p456_p2 = por %p455_p1, %p454_p0 }
  0x1b   : > { %v428_v15 = vpop.eup %427  ;;  %p452_p13 = pneg %p451_p12 }
  0x1c   : > { %210 = vmatpush.bf16.msra.mxu0 %v381_v2  ;;  %v225_v16 = vmul.f32 32.0, %v428_v15  ;;  %vm229_vm2 = vweird.f32 %v428_v15 }
  0x1d   : > { %p457_p3 = pnand %p456_p2, %p452_p13 }
  0x1e   : > { %v226_v17 = vsub.f32 1.0, %v225_v16 }
  0x1f   : > { %374 = vmatmul.msk.bf16.vlgmr.msra.gmra.mxu0 %vm199_vm0, %v173_v5 }
  0x20   : > { %v227_v18 = vmul.f32 %v428_v15, %v226_v17 }
  0x22   : > { %v228_v19 = vadd.f32 %v428_v15, %v227_v18 }
  0x24   : > { %v230_v20 = vsel %vm229_vm2, %v428_v15, %v228_v19 }
  0x9c   : > { %v212_v8 = vpop.f32.mrf.mxu0 }
  0x9d   : > { %v213_v9 = vadd.f32 %v212_v8, %v180_v7 }
  0x9f   : > { %v218_v10 = vsel %vm217_vm1, %v213_v9, 0.0 }
  0xa0   : > { %219 = vadd.xlane.f32.xlu0 %v218_v10 }
  0xa4   : > { %v214_v11 = vpop.f32.mrf.mxu0 }
  0xa5   : > { %v215_v12 = vadd.f32 %v214_v11, %v180_v7 }
  0xa7   : > { %v221_v13 = vsel %vm217_vm1, %v215_v12, 0.0 }
  0xa8   : > { %222 = vadd.xlane.f32.xlu0 %v221_v13 }
 0x113   : > { %v220_v21 = vpop.xlane.xlu0 %219 }
 0x114   : > { %v231_v22 = vmul.f32 %v230_v20, %v220_v21 }
 0x116   : > { %v233_v23 = vsub.f32 %v213_v9, %v231_v22 }
 0x118   : > { %v235_v24 = vmul.f32 %v233_v23, %v233_v23 }
 0x11a   : > { %v237_v25 = vsel %vm217_vm1, %v235_v24, 0.0 }
 0x11b   : > { %238 = vadd.xlane.f32.xlu1 %v237_v25  ;;  %v223_v26 = vpop.xlane.xlu0 %222 }
 0x11c   : > { %v232_v27 = vmul.f32 %v230_v20, %v223_v26 }
 0x11e   : > { %v234_v28 = vsub.f32 %v215_v12, %v232_v27 }
 0x120   : > { %v236_v29 = vmul.f32 %v234_v28, %v234_v28 }
 0x122   : > { %v240_v30 = vsel %vm217_vm1, %v236_v29, 0.0 }
 0x123   : > { %241 = vadd.xlane.f32.xlu1 %v240_v30 }
 0x18e   : > { %v239_v31 = vpop.xlane.xlu1 %238 }
 0x18f   : > { %v243_v32 = vmul.f32 %v239_v31, %v230_v20 }
 0x191   : > { %v245_v33 = vadd.f32 1e-05, %v243_v32 }
 0x193   : > { %429 = vrsqrt.f32 %v245_v33  ;;  %vm253_vm4 = vweird.f32 %v245_v33 }
 0x196   : > { %v242_v34 = vpop.xlane.xlu1 %241 }
 0x197   : > { %v244_v35 = vmul.f32 %v242_v34, %v230_v20 }
 0x199   : > { %v430_v36 = vpop.eup %429  ;;  %v246_v37 = vadd.f32 1e-05, %v244_v35 }
 0x19a   : > { %v248_v38 = vmul.f32 %v430_v36, %v245_v33  ;;  %vm254_vm3 = vweird.f32 %v430_v36 }
 0x19b   : > { %431 = vrsqrt.f32 %v246_v37  ;;  %vm255_vm5 = vmor %vm253_vm4, %vm254_vm3  ;;  %vm263_vm7 = vweird.f32 %v246_v37 }
 0x19c   : > { %v249_v39 = vmul.f32 %v430_v36, %v248_v38 }
 0x19e   : > { %v250_v40 = vmul.f32 0.5, %v249_v39 }
 0x1a0   : > { %v251_v41 = vsub.f32 1.5, %v250_v40 }
 0x1a1   : > { %v432_v42 = vpop.eup %431 }
 0x1a2   : > { %v252_v43 = vmul.f32 %v430_v36, %v251_v41  ;;  %v258_v44 = vmul.f32 %v432_v42, %v246_v37  ;;  %vm264_vm6 = vweird.f32 %v432_v42 }
 0x1a3   : > { %vm265_vm8 = vmor %vm263_vm7, %vm264_vm6 }
 0x1a4   : > { %v256_v46 = vsel %vm255_vm5, %v430_v36, %v252_v43  ;;  %v259_v47 = vmul.f32 %v432_v42, %v258_v44 }
 0x1a5   : > { %v267_v49 = vmul.f32 %v256_v46, %v233_v23 }
 0x1a6   : > { %v260_v50 = vmul.f32 0.5, %v259_v47 }
 0x1a7   : > { %v270_v51 = vmul.f32 %v269_v45, %v267_v49 }
 0x1a8   : > { %v261_v52 = vsub.f32 1.5, %v260_v50 }
 0x1a9   : > { %v273_v53 = vadd.f32 %v272_v48, %v270_v51 }
 0x1aa   : > { %v262_v54 = vmul.f32 %v432_v42, %v261_v52 }
 0x1ab   : > { %275 = vst.msk [vmem:[%s163_s25] sm:$0xff] %vm217_vm1, %v273_v53 }
 0x1ac   : > { %v266_v55 = vsel %vm265_vm8, %v432_v42, %v262_v54 }
 0x1ad   : > { %v268_v56 = vmul.f32 %v266_v55, %v234_v28 }
 0x1af   : > { %v271_v57 = vmul.f32 %v269_v45, %v268_v56 }
 0x1b1   : > { %v274_v58 = vadd.f32 %v272_v48, %v271_v57 }
 0x1b3   : > { %276 = vst.msk [vmem:[%s163_s25 + $0x8] sm:$0xff] %vm217_vm1, %v274_v58 }
 0x1b4   : > { %460 = shalt.err (!%p457_p3)
}
 0x1b5   : > { %s498_s8 = smov 128   ;;  %s499_s9 = smov 8  }
 0x1b6   : > { %385 = dma.vmem_to_hbm [thread:$0]  (%p558_p5), %s291_s26, 256, %s293_s27, %s278_s16, %s498_s8, %s498_s8, %s499_s9  }
 0x1b7 PF: > { %p391_p4 = scmp.ge.s32.totalorder %s495_s15, 2  ;;  %s307_s10 = sand.u32 1, %s483_s12  }
 0x1b8   : > { %s308_s11 = scalar_lea.sflag [#allocation3], %s307_s10 }
 0x1b9   : > { %p388_p7 = pnand %p391_p4, %p562_p6 }
 0x1bb   : > { %p389_p8 = pneg %p388_p7 }
 0x1bd   : > { %478 = dma.done.wait (%p389_p8), %s308_s11, 256  }
 0x1be   : > { %480 = vsyncadd (%p389_p8), %s308_s11, 4294967040  ;;  %p13_p9 = scmp.ge.s32.totalorder %s545_s18, 4   ;;  %s634_s12 = smov %s487_s13 }
 0x1bf   : > { %s635_s13 = smov %s491_s14  ;;  %s636_s14 = smov %s556_s21 }
 0x1c0   : > { %s637_s15 = smov %s545_s18  ;;  %15 = sbr.rel (!%p13_p9) target bundleno = 3 (0x3), region = 67 }
 0x1c5   :  { %314 = vsyncpa [#allocation3], 1 }
 0x1c6   :  { %316 = vsyncpa [#allocation3 + $0x1], 1 }

</bundles_post_ra>
